<compile_context>
chip_gen: v6e
topology: v6e:2x2x1
jax: 0.10.0
libtpu: 0.0.40
codegen_flags: <defaults>
</compile_context>

<pallas_src>
import jax
import jax.numpy as jnp
from jax.experimental import pallas as pl
from jax.experimental.pallas import tpu as pltpu


def model_wrapper_kernel(x_ref, wf_ref, wc_ref, bc_ref, out_ref, feat_acc):
    # x_ref:    (B_pad, tk)     bf16  flattened-input column tile
    # wf_ref:   (tk, tf)        bf16  feature-extractor weight tile
    # wc_ref:   (tf, O_pad)     bf16  classifier weight row tile
    # bc_ref:   (1, O_pad)      f32   fused bias (bc + bf @ wc)
    # out_ref:  (B_pad, O_pad)  f32   VMEM-resident logits accumulator
    # feat_acc: (B_pad, tf)     f32   per-F-tile feature accumulator over K
    f = pl.program_id(0)
    k = pl.program_id(1)

    @pl.when(jnp.logical_and(f == 0, k == 0))
    def _init_out():
        out_ref[...] = jnp.broadcast_to(bc_ref[...], out_ref.shape)

    @pl.when(k == 0)
    def _init_feats():
        feat_acc[...] = jnp.zeros_like(feat_acc)

    # Stage 1 partial: (B, tf) += x_tile @ wf_tile   (bf16 MXU, f32 accumulation)
    feat_acc[...] += jnp.dot(x_ref[...], wf_ref[...],
                             preferred_element_type=jnp.float32)

    @pl.when(k == pl.num_programs(1) - 1)
    def _stage2():
        # Stage 2: this F tile's contribution to the logits.
        #   (x @ wf) @ wc == sum_f (x @ wf[:, f]) @ wc[f, :]
        out_ref[...] += jnp.dot(feat_acc[...].astype(jnp.bfloat16), wc_ref[...],
                                preferred_element_type=jnp.float32)


def _round_up(n, m):
    return -(-n // m) * m


def prepare_params(wf, bf, wc, bc, *, tf=512, tk=512):
    """One-time weight prep: pad to tile multiples, cast to bf16, fold bf into bc.

    Done once (outside the forward path) so the per-call forward streams only
    already-padded bf16 weights -- no per-call padding/casting HBM traffic.
    """
    K, F = wf.shape
    O = wc.shape[1]

    tf = _round_up(min(tf, _round_up(F, 128)), 128)
    tk = _round_up(min(tk, _round_up(K, 128)), 128)
    F_pad = _round_up(F, tf)
    K_pad = _round_up(K, tk)
    O_pad = max(128, _round_up(O, 128))          # lane-dense output stores

    wf_p = jnp.zeros((K_pad, F_pad), jnp.bfloat16).at[:K, :F].set(
        wf.astype(jnp.bfloat16))
    wc_p = jnp.zeros((F_pad, O_pad), jnp.bfloat16).at[:F, :O].set(
        wc.astype(jnp.bfloat16))
    # Fold feature bias through the classifier (exact algebra, no weight folding):
    #   (x@wf + bf) @ wc + bc == x@wf@wc + (bf @ wc + bc)
    bc_eff = bc + bf @ wc_p[:F, :O].astype(jnp.float32)
    bc_p = jnp.zeros((1, O_pad), jnp.float32).at[:, :O].set(bc_eff)

    return dict(wf=wf_p, wc=wc_p, bc=bc_p,
                K=K, F=F, O=O, K_pad=K_pad, F_pad=F_pad, O_pad=O_pad,
                tf=tf, tk=tk)


def model_wrapper_forward(x_nchw, params):
    p = params
    K, O = p["K"], p["O"]
    K_pad, F_pad, O_pad = p["K_pad"], p["F_pad"], p["O_pad"]
    tf, tk = p["tf"], p["tk"]

    B = x_nchw.shape[0]
    x_flat = x_nchw.reshape(B, -1)
    assert x_flat.shape[1] == K, "flattened input dim mismatch"

    B_pad = max(16, _round_up(B, 16))            # bf16-friendly sublane multiple
    x_p = jnp.zeros((B_pad, K_pad), jnp.bfloat16).at[:B, :K].set(
        x_flat.astype(jnp.bfloat16))

    nf = F_pad // tf
    nk = K_pad // tk

    out_p = pl.pallas_call(
        model_wrapper_kernel,
        out_shape=jax.ShapeDtypeStruct((B_pad, O_pad), jnp.float32),
        grid_spec=pltpu.PrefetchScalarGridSpec(
            num_scalar_prefetch=0,
            grid=(nf, nk),                                    # F outer, K inner
            in_specs=[
                pl.BlockSpec((B_pad, tk),  lambda f, k: (0, k)),  # x column tile
                pl.BlockSpec((tk, tf),     lambda f, k: (k, f)),  # wf tile
                pl.BlockSpec((tf, O_pad),  lambda f, k: (f, 0)),  # wc row tile
                pl.BlockSpec((1, O_pad),   lambda f, k: (0, 0)),  # fused bias
            ],
            out_specs=pl.BlockSpec((B_pad, O_pad), lambda f, k: (0, 0)),
            scratch_shapes=[pltpu.VMEM((B_pad, tf), jnp.float32)],
        ),
        compiler_params=pltpu.CompilerParams(
            # out accumulates across F and feat_acc across K -> both reductions.
            dimension_semantics=("arbitrary", "arbitrary")),
    )(x_p, p["wf"], p["wc"], p["bc"])

    return out_p[:B, :O]


def init_linear_params(key, fan_in, fan_out):
    # Deterministic init mimicking torch.nn.Linear default (uniform(+-1/sqrt(fan_in))).
    kw, kb = jax.random.split(key)
    bound = 1.0 / jnp.sqrt(fan_in)
    # stored as (fan_in, fan_out) so the kernel does x @ W (== x @ torch_W.T)
    w = jax.random.uniform(kw, (fan_in, fan_out), jnp.float32, -bound, bound)
    b = jax.random.uniform(kb, (1, fan_out), jnp.float32, -bound, bound)
    return w, b


if __name__ == "__main__":
    key = jax.random.PRNGKey(0)
    kx, kf, kc = jax.random.split(key, 3)

    # Small shapes consistent with an image-classification wrapper.
    B, C, H, W = 2, 4, 16, 16
    x = jax.random.normal(kx, (B, C, H, W), jnp.float32)    # NCHW input

    K = C * H * W                # 1024 flattened features
    FEAT = 1000                  # wrapped model emits 1000-dim features
    NUM_CLASSES = 10             # classifier = Linear(1000, 10)

    wf, bf = init_linear_params(kf, K, FEAT)        # synthetic `model` stand-in
    wc, bc = init_linear_params(kc, FEAT, NUM_CLASSES)

    # One-time weight prep (hoisted out of the forward path).
    params = prepare_params(wf, bf, wc, bc, tf=512, tk=512)
    forward = jax.jit(lambda xx: model_wrapper_forward(xx, params))

    out = jax.block_until_ready(forward(x))

    # Reference in plain JAX using the same bf16 roundings the kernel applies.
    x_q = x.reshape(B, -1).astype(jnp.bfloat16)
    wf_q = wf.astype(jnp.bfloat16)
    wc_q = wc.astype(jnp.bfloat16)
    feats = jnp.dot(x_q, wf_q, preferred_element_type=jnp.float32)
    bc_eff = bc + bf @ wc_q.astype(jnp.float32)
    ref = jnp.dot(feats.astype(jnp.bfloat16), wc_q,
                  preferred_element_type=jnp.float32) + bc_eff

    assert out.shape == (B, NUM_CLASSES)
    assert jnp.allclose(out, ref, atol=2e-3, rtol=2e-3)

    print("KERNEL_OK")
</pallas_src>

<mosaic_0001>
module attributes {stable_mosaic.version = 11 : i64} {
  func.func @model_wrapper_kernel(%arg0: i32, %arg1: i32, %arg2: memref<16x512xbf16, #tpu.memory_space<vmem>>, %arg3: memref<512x512xbf16, #tpu.memory_space<vmem>>, %arg4: memref<512x128xbf16, #tpu.memory_space<vmem>>, %arg5: memref<1x128xf32, #tpu.memory_space<vmem>>, %arg6: memref<16x128xf32, #tpu.memory_space<vmem>>, %arg7: memref<16x512xf32, #tpu.memory_space<vmem>>) attributes {dimension_semantics = [#tpu.dimension_semantics<arbitrary>, #tpu.dimension_semantics<arbitrary>], iteration_bounds = array<i64: 2, 2>, scalar_prefetch = 0 : i64, scratch_operands = 1 : i64, tpu.core_type = #tpu.core_type<tc>, window_params = [{transform_indices = @transform_0, window_bounds = array<i64: 16, 512>}, {transform_indices = @transform_1, window_bounds = array<i64: 512, 512>}, {transform_indices = @transform_2, window_bounds = array<i64: 512, 128>}, {pipeline_mode = #tpu.pipeline_mode<synchronous>, transform_indices = @transform_3, window_bounds = array<i64: 1, 128>}, {pipeline_mode = #tpu.pipeline_mode<synchronous>, transform_indices = @transform_4, window_bounds = array<i64: 16, 128>}]} {
    %c0_i32 = arith.constant 0 : i32
    %0 = arith.cmpi eq, %arg0, %c0_i32 : i32
    %c0_i32_0 = arith.constant 0 : i32
    %1 = arith.cmpi eq, %arg1, %c0_i32_0 : i32
    %2 = arith.andi %0, %1 : i1
    %3 = arith.extui %2 : i1 to i32
    %c0_i32_1 = arith.constant 0 : i32
    %4 = arith.cmpi ne, %3, %c0_i32_1 : i32
    scf.if %4 {
      %c0_12 = arith.constant 0 : index
      %c0_13 = arith.constant 0 : index
      %17 = vector.load %arg5[%c0_12, %c0_13] : memref<1x128xf32, #tpu.memory_space<vmem>>, vector<1x128xf32>
      %18 = vector.shape_cast %17 : vector<1x128xf32> to vector<1x128xf32>
      %19 = vector.broadcast %18 : vector<1x128xf32> to vector<16x128xf32>
      %c0_14 = arith.constant 0 : index
      %c0_15 = arith.constant 0 : index
      %20 = vector.load %arg6[%c0_14, %c0_15] : memref<16x128xf32, #tpu.memory_space<vmem>>, vector<16x128xf32>
      tpu.vector_store %arg6[%c0_14, %c0_15], %19 {strides = array<i32>} : memref<16x128xf32, #tpu.memory_space<vmem>>, vector<16x128xf32>,
    } else {
    }
    %c0_i32_2 = arith.constant 0 : i32
    %5 = arith.cmpi eq, %arg1, %c0_i32_2 : i32
    %6 = arith.extui %5 : i1 to i32
    %c0_i32_3 = arith.constant 0 : i32
    %7 = arith.cmpi ne, %6, %c0_i32_3 : i32
    scf.if %7 {
      %cst_12 = arith.constant 0.000000e+00 : f32
      %17 = vector.broadcast %cst_12 : f32 to vector<16x512xf32>
      %c0_13 = arith.constant 0 : index
      %c0_14 = arith.constant 0 : index
      %18 = vector.load %arg7[%c0_13, %c0_14] : memref<16x512xf32, #tpu.memory_space<vmem>>, vector<16x512xf32>
      tpu.vector_store %arg7[%c0_13, %c0_14], %17 {strides = array<i32>} : memref<16x512xf32, #tpu.memory_space<vmem>>, vector<16x512xf32>,
    } else {
    }
    %c0 = arith.constant 0 : index
    %c0_4 = arith.constant 0 : index
    %8 = vector.load %arg7[%c0, %c0_4] : memref<16x512xf32, #tpu.memory_space<vmem>>, vector<16x512xf32>
    %c0_5 = arith.constant 0 : index
    %c0_6 = arith.constant 0 : index
    %9 = vector.load %arg2[%c0_5, %c0_6] : memref<16x512xbf16, #tpu.memory_space<vmem>>, vector<16x512xbf16>
    %c0_7 = arith.constant 0 : index
    %c0_8 = arith.constant 0 : index
    %10 = vector.load %arg3[%c0_7, %c0_8] : memref<512x512xbf16, #tpu.memory_space<vmem>>, vector<512x512xbf16>
    %cst = arith.constant dense<0.000000e+00> : vector<16x512xf32>
    %11 = tpu.matmul %9, %10, %cst {dimension_numbers = #tpu.dot_dimension_numbers<[1], [0], [0], [1], [0, 0, 1, 1], [], []>} : vector<16x512xbf16>, vector<512x512xbf16>, vector<16x512xf32> -> vector<16x512xf32>
    %12 = arith.addf %8, %11 : vector<16x512xf32>
    %c0_9 = arith.constant 0 : index
    %c0_10 = arith.constant 0 : index
    %13 = vector.load %arg7[%c0_9, %c0_10] : memref<16x512xf32, #tpu.memory_space<vmem>>, vector<16x512xf32>
    tpu.vector_store %arg7[%c0_9, %c0_10], %12 {strides = array<i32>} : memref<16x512xf32, #tpu.memory_space<vmem>>, vector<16x512xf32>,
    %c1_i32 = arith.constant 1 : i32
    %14 = arith.cmpi eq, %arg1, %c1_i32 : i32
    %15 = arith.extui %14 : i1 to i32
    %c0_i32_11 = arith.constant 0 : i32
    %16 = arith.cmpi ne, %15, %c0_i32_11 : i32
    scf.if %16 {
      %c0_12 = arith.constant 0 : index
      %c0_13 = arith.constant 0 : index
      %17 = vector.load %arg6[%c0_12, %c0_13] : memref<16x128xf32, #tpu.memory_space<vmem>>, vector<16x128xf32>
      %c0_14 = arith.constant 0 : index
      %c0_15 = arith.constant 0 : index
      %18 = vector.load %arg7[%c0_14, %c0_15] : memref<16x512xf32, #tpu.memory_space<vmem>>, vector<16x512xf32>
      %19 = arith.truncf %18 : vector<16x512xf32> to vector<16x512xbf16>
      %c0_16 = arith.constant 0 : index
      %c0_17 = arith.constant 0 : index
      %20 = vector.load %arg4[%c0_16, %c0_17] : memref<512x128xbf16, #tpu.memory_space<vmem>>, vector<512x128xbf16>
      %cst_18 = arith.constant dense<0.000000e+00> : vector<16x128xf32>
      %21 = tpu.matmul %19, %20, %cst_18 {dimension_numbers = #tpu.dot_dimension_numbers<[1], [0], [0], [1], [0, 0, 1, 1], [], []>} : vector<16x512xbf16>, vector<512x128xbf16>, vector<16x128xf32> -> vector<16x128xf32>
      %22 = arith.addf %17, %21 : vector<16x128xf32>
      %c0_19 = arith.constant 0 : index
      %c0_20 = arith.constant 0 : index
      %23 = vector.load %arg6[%c0_19, %c0_20] : memref<16x128xf32, #tpu.memory_space<vmem>>, vector<16x128xf32>
      tpu.vector_store %arg6[%c0_19, %c0_20], %22 {strides = array<i32>} : memref<16x128xf32, #tpu.memory_space<vmem>>, vector<16x128xf32>,
    } else {
    }
    return
  }
  func.func @transform_0(%arg0: i32, %arg1: i32) -> (i32, i32) {
    %c0_i32 = arith.constant 0 : i32
    %c0_i32_0 = arith.constant 0 : i32
    return %c0_i32, %arg1 : i32, i32
  }
  func.func @transform_1(%arg0: i32, %arg1: i32) -> (i32, i32) {
    %c0_i32 = arith.constant 0 : i32
    return %arg1, %arg0 : i32, i32
  }
  func.func @transform_2(%arg0: i32, %arg1: i32) -> (i32, i32) {
    %c0_i32 = arith.constant 0 : i32
    %c0_i32_0 = arith.constant 0 : i32
    return %arg0, %c0_i32 : i32, i32
  }
  func.func @transform_3(%arg0: i32, %arg1: i32) -> (i32, i32) {
    %c0_i32 = arith.constant 0 : i32
    %c0_i32_0 = arith.constant 0 : i32
    %c0_i32_1 = arith.constant 0 : i32
    return %c0_i32, %c0_i32_0 : i32, i32
  }
  func.func @transform_4(%arg0: i32, %arg1: i32) -> (i32, i32) {
    %c0_i32 = arith.constant 0 : i32
    %c0_i32_0 = arith.constant 0 : i32
    %c0_i32_1 = arith.constant 0 : i32
    return %c0_i32, %c0_i32_0 : i32, i32
  }
}

</mosaic_0001>

<bundles_post_ra>
// kernel: _lambda_.1
= control target key start
LH: loop header
LB: loop body
LE: loop exit
PB: predicated region body
PF: predicated region fallthrough
CT: control target
= control target key end

     0   :  { %s3061_s0 = inlined_call_operand.vmem [shape: bf16[16,1024], index: 0, kind: input, shape index: {}]   ;;  %s3062_s1 = inlined_call_operand.hbm [shape: bf16[1024,1024], index: 1, kind: input, shape index: {}]   ;;  %s3063_s2 = inlined_call_operand.hbm [shape: bf16[1024,128], index: 2, kind: input, shape index: {}]   ;;  %s3064_s3 = inlined_call_operand.hbm [shape: f32[1,128], index: 3, kind: input, shape index: {}]   ;;  %s3065_s4 = inlined_call_operand.vmem [shape: f32[16,128], index: 4, kind: output, shape index: {}]  }
   0x1   :  { %3078 = sst [smem:[#allocation22_spill]] %s3061_s0 }
   0x2   :  { %3079 = sst [smem:[#allocation23_spill]] %s3062_s1 }
   0x3   :  { %3080 = sst [smem:[#allocation24_spill]] %s3064_s3 }
   0x4   :  { %3081 = sst [smem:[#allocation25_spill]] %s3065_s4 }
   0x5   :  { %9 = vsyncpa [#allocation5], 0 }
   0x6   :  { %11 = vsyncpa [#allocation5 + $0x1], 0 }
   0x7   :  { %12 = vsyncpa [#allocation7], 0 }
   0x8   :  { %14 = vsyncpa [#allocation7 + $0x1], 0  ;;  %s2620_s15 = smov 0   ;;  %s2622_s16 = smov 0  }
   0x9   :  { %s2624_s17 = smov 0   ;;  %s2626_s18 = smov 0  }
   0xa   :  { %s2628_s19 = smov 0   ;;  %s2630_s20 = smov 0  }
   0xb   :  { %s2632_s21 = smov 0   ;;  %s2634_s22 = smov 0  }
   0xc   :  { %s2636_s23 = smov 0   ;;  %s2638_s24 = smov 0  }
   0xd   :  { %s2640_s25 = smov 0   ;;  %s2642_s26 = smov 0  }
   0xe   :  { %s2644_s27 = smov 0  }
   0xf LB: > { %3082 = sst [smem:[#allocation12_spill]] %s2556_s20  ;;  %s3066_s28 = sadd.s32 4294967295, %s2584_s27   ;;  %s2584_s27 = sphi %s2644_s27, %s20_s27   ;;  %s2580_s26 = sphi %s2642_s26, %s3128_s26   ;;  %s2576_s25 = sphi %s2640_s25, %s3120_s25   ;;  %s2572_s24 = sphi %s2638_s24, %s3127_s24   ;;  %s2568_s23 = sphi %s2636_s23, %s3119_s23   ;;  %s2564_s22 = sphi %s2634_s22, %s3118_s22   ;;  %s2560_s21 = sphi %s2632_s21, %s3117_s21   ;;  %s2556_s20 = sphi %s2630_s20, %s3116_s20   ;;  %s2552_s19 = sphi %s2628_s19, %s3126_s19   ;;  %s2548_s18 = sphi %s2626_s18, %s3125_s18   ;;  %s2544_s17 = sphi %s2624_s17, %s3124_s17   ;;  %s2540_s16 = sphi %s2622_s16, %s3123_s16   ;;  %s2536_s15 = sphi %s2620_s15, %s3122_s15  }
  0x10   : > { %3083 = sst [smem:[#allocation13_spill]] %s2564_s22  ;;  %s29_s29 = sadd.s32 1, %s2576_s25 }
  0x11   : > { %3084 = sst [smem:[#allocation14_spill]] %s2568_s23  ;;  %p30_p0 = scmp.ge.s32.totalorder %s29_s29, 2 }
  0x12   : > { %3085 = sst [smem:[#allocation15_spill]] %s2572_s24  ;;  %s32_s30 = sadd.s32 1, %s2580_s26 }
  0x13   : > { %3086 = sst [smem:[#allocation16_spill]] %s2576_s25  ;;  %s39_s5 = sadd.s32 1, %s2564_s22 }
  0x14   : > { %p46_p1 = scmp.ne.s32.totalorder %s2564_s22, %s2560_s21  ;;  %s3130_s29 = smov (%p30_p0, %s29_s29), 0 }
  0x15   : > { %3087 = sst [smem:[#allocation17_spill]] %s3130_s29  ;;  %s3132_s30 = smov (!%p30_p0, %s32_s30), %s2580_s26 }
  0x16   : > { %s36_s6 = ssub.s32 %s2576_s25, %s3130_s29  ;;  %p47_p2 = scmp.eq.s32.totalorder %s2584_s27, 0 }
  0x17   : > { %p34_p3 = scmp.ge.s32.totalorder %s3132_s30, 2  ;;  %p37_p4 = scmp.eq.s32.totalorder %s36_s6, 0 }
  0x18   : > { %p2699_p5 = por %p47_p2, %p46_p1  ;;  %s67_s8 = sadd.s32 1, %s2556_s20 }
  0x19   : > { %s3134_s30 = smov (%p34_p3, %s3132_s30), 0  ;;  %p74_p6 = scmp.ne.s32.totalorder %s2556_s20, %s2552_s19 }
  0x1a   : > { %3089 = sst [smem:[#allocation18_spill]] %s3134_s30  ;;  %s63_s10 = ssub.s32 %s2580_s26, %s3134_s30 }
  0x1b   : > { %s2707_s9 = scalar_select %p37_p4, %s2564_s22, %s39_s5  }
  0x1c   : > { %s64_s11 = sor.u32 %s63_s10, %s36_s6  ;;  %p80_p7 = scmp.ne.s32.totalorder %s2552_s19, %s2548_s18 }
  0x1d   : > { %3090 = sst [smem:[#allocation19_spill]] %s2707_s9  ;;  %p65_p8 = scmp.eq.s32.totalorder %s64_s11, 0 }
  0x1e   : > { %p2717_p9 = por %p74_p6, %p47_p2  ;;  %p2723_p10 = scmp.eq.s32.totalorder %s3066_s28, 0 }
  0x1f   : > { %p91_p11 = scmp.eq.s32.totalorder %s63_s10, 0  ;;  %s93_s5 = sadd.s32 1, %s2544_s17 }
  0x20   : > { %s2728_s14 = scalar_select %p65_p8, %s2556_s20, %s67_s8  }
  0x21   : > { %p2732_p12 = por %p2723_p10, %p80_p7  ;;  %p100_p13 = scmp.ne.s32.totalorder %s2544_s17, %s2540_s16 }
  0x22   : > { %3093 = sst [smem:[#allocation20_spill]] %s2728_s14  ;;  %p106_p0 = scmp.ne.s32.totalorder %s2540_s16, %s2536_s15 }
  0x23   : > { %s3094_s18 = scalar_select %p2732_p12, 1, 0 }
  0x24   : > { %s2738_s6 = scalar_select %p91_p11, %s2544_s17, %s93_s5  }
  0x25   : > { %p1802_p1 = scmp.ge.s32.totalorder %s2584_s27, 1  ;;  %p159_p3 = scmp.lt.s32.totalorder %s2584_s27, 5 }
  0x26   : > { %3095 = sst [smem:[#allocation21_spill]] %s2738_s6  ;;  %p2748_p4 = por %p100_p13, %p47_p2 }
  0x27   : > { %p2754_p6 = por %p106_p0, %p2723_p10  ;;  %p2758_p7 = pnand %p1802_p1, %p159_p3 }
  0x28   : > { %s3096_s11 = scalar_select %p2748_p4, 1, 0 }
  0x29   : > { %s3097_s8 = scalar_select %p2754_p6, 1, 0 }
  0x2a   : > { %s3098_s10 = scalar_select %p2758_p7, 1, 0 }
  0x2b   : > { %p2045_p8 = pneg %p2758_p7  ;;  %s2586_s15 = smov [#allocation8]  }
  0x2c   : > { %s172_s5 = sshll.u32 %s2586_s15, 4  ;;  %s173_s5 = int_to_ptr.vmem [resolvable:$true] %s172_s5 }
  0x2d   : > { %p2046_p2 = pnand %p2045_p8, %p2723_p10  ;;  %s2403_s28 = scalar_lea.vmem %s173_s5, 16 }
  0x2e   : > { %p2404_p13 = scmp.ne.s32.totalorder %s173_s5, %s2403_s28  ;;  %s2410_s30 = scalar_lea.vmem %s173_s5, 32 }
  0x2f   : > { %p2394_p11 = pneg %p2046_p2  ;;  %p2411_p4 = scmp.lt.s32.totalorder %s173_s5, %s173_s5 }
  0x30   : > { %p2412_p6 = scmp.lt.s32.totalorder %s2410_s30, %s2403_s28 }
  0x31   : > { %p2406_p12 = pnand %p2404_p13, %p2394_p11 }
  0x32   : > { %p2413_p1 = por %p2412_p6, %p2411_p4 }
  0x33   : > { %p2407_p0 = pneg %p2406_p12 }
  0x35   : > { %p2414_p3 = pnand %p2413_p1, %p2407_p0 }
  0x37   : > { %2417 = shalt.err (!%p2414_p3)
}
  0x38   : > { %s3099_s3 = sld [smem:[#allocation24_spill]]  ;;  %p1804_p7 = scmp.ge.s32.totalorder %s2584_s27, 4 }
  0x3a   : > { %179 = sbr.rel (%p1804_p7) target bundleno = 110 (0x6e), region = 20 }
  0x3e   : > { %2048 = dma.hbm_to_vmem [thread:$0]  (!%p2046_p2), %s3099_s3, 16, %s173_s5, [#allocation7]  }
  0x3f   : > { %182 = sbr.rel (!%p2699_p5) target bundleno = 75 (0x4b), region = 24  ;;  %s184_s15 = sand.u32 (%p2699_p5), 1, %s2564_s22  }
  0x40   : > { %s1990_s14 = sshll.u32 (%p2699_p5), %s2576_s25, 4  ;;  %s1805_s6 = sshll.u32 (%p2699_p5), %s184_s15, 5 }
  0x41   : > { %s3100_s0 = sld [smem:[#allocation22_spill]] (%p2699_p5)  ;;  %s186_s29 = scalar_lea.vmem (%p2699_p5), [#allocation3], %s1805_s6 }
  0x47   : > { %s189_s30 = scalar_lea.vmem %s3100_s0, %s1990_s14 }
  0x48   : > { %v202_v0 = vld [vmem:[%s189_s30] sm:$0xff]  ;;  %v204_v1 = vld [vmem:[%s189_s30 + $0x8] sm:$0xff] }
  0x49   : > { %v206_v2 = vld [vmem:[%s189_s30 + $0x20] sm:$0xff]  ;;  %203 = vst [vmem:[%s186_s29] sm:$0xff] %v202_v0  ;;  %205 = vst [vmem:[%s186_s29 + $0x8] sm:$0xff] %v204_v1  ;;  %v208_v3 = vld [vmem:[%s189_s30 + $0x28] sm:$0xff] }
  0x4a   : > { %207 = vst [vmem:[%s186_s29 + $0x10] sm:$0xff] %v206_v2  ;;  %209 = vst [vmem:[%s186_s29 + $0x18] sm:$0xff] %v208_v3 }
  0x4b PF: > { %s216_s7 = sand.u32 1, %s2556_s20   ;;  %s1810_s9 = sshll.u32 %s2580_s26, 2 }
  0x4c   : > { %s1808_s5 = sshll.u32 %s216_s7, 10  ;;  %s1991_s15 = sshll.u32 %s2576_s25, 9 }
  0x4d   : > { %s227_s4 = sadd.s32 %s1991_s15, %s1810_s9  ;;  %s220_s14 = scalar_lea.vmem [#allocation4], %s1808_s5 }
  0x4e   : > { %s230_s28 = sshll.u32 %s220_s14, 4  ;;  %s1812_s0 = sshll.u32 %s227_s4, 6  ;;  %s231_s28 = int_to_ptr.vmem [resolvable:$true] %s230_s28 }
  0x4f   : > { %s3101_s1 = sld [smem:[#allocation23_spill]]  ;;  %s217_s30 = scalar_lea.sflag [#allocation5], %s216_s7 }
  0x50   : > { %s2430_s29 = scalar_lea.vmem %s231_s28, 16384  ;;  %s2587_s23 = smov [#allocation4]  }
  0x51   : > { %p2431_p5 = scmp.ne.s32.totalorder %s231_s28, %s2430_s29  ;;  %s2434_s20 = sshll.u32 %s2587_s23, 4  ;;  %s2435_s20 = int_to_ptr.vmem [resolvable:$false] %s2434_s20 }
  0x52   : > { %s2436_s24 = scalar_lea.vmem %s2435_s20, 32768  ;;  %p2437_p6 = scmp.lt.s32.totalorder %s231_s28, %s2435_s20 }
  0x53   : > { %p2432_p12 = pnand %p2431_p5, %p2717_p9  ;;  %p2438_p7 = scmp.lt.s32.totalorder %s2436_s24, %s2430_s29 }
  0x55   : > { %s229_s22 = scalar_lea.hbm %s3101_s1, %s1812_s0  ;;  %p2433_p4 = pneg %p2432_p12 }
  0x56   : > { %p2439_p8 = por %p2438_p7, %p2437_p6 }
  0x58   : > { %p2440_p2 = pnand %p2439_p8, %p2433_p4 }
  0x5a   : > { %2443 = shalt.err (!%p2440_p2)
}
  0x5b   : > { %s2588_s9 = smov 512   ;;  %s2589_s0 = smov 256  }
  0x5c   : > { %s2590_s3 = smov 16   ;;  %s240_s7 = sand.u32 1, %s2584_s27  }
  0x5d   : > { %2039 = dma.hbm_to_vmem [thread:$0]  (%p2717_p9), %s229_s22, 16384, %s231_s28, %s217_s30, %s2588_s9, %s2589_s0, %s2590_s3  }
  0x5e   : > { %s242_s5 = sand.u32 1, %s2544_s17   ;;  %s1992_s15 = sshll.u32 %s2580_s26, 12 }
  0x5f   : > { %s1813_s23 = sshll.u32 %s242_s5, 8  ;;  %s250_s24 = scalar_lea.hbm %s3063_s2, %s1992_s15 }
  0x60   : > { %s244_s14 = scalar_lea.vmem [#allocation6], %s1813_s23  ;;  %s241_s29 = scalar_lea.sflag [#allocation7], %s240_s7 }
  0x61   : > { %s251_s6 = sshll.u32 %s244_s14, 4  ;;  %p3102_p13 = scmp.ne.s32.totalorder %s3096_s11, 0  ;;  %s252_s6 = int_to_ptr.vmem [resolvable:$true] %s251_s6 }
  0x62   : > { %s2456_s1 = scalar_lea.vmem %s252_s6, 4096  ;;  %s2591_s25 = smov [#allocation6]  }
  0x63   : > { %p2457_p11 = scmp.ne.s32.totalorder %s252_s6, %s2456_s1  ;;  %s2460_s12 = sshll.u32 %s2591_s25, 4  ;;  %s2461_s12 = int_to_ptr.vmem [resolvable:$false] %s2460_s12 }
  0x64   : > { %s2462_s22 = scalar_lea.vmem %s2461_s12, 8192  ;;  %p2463_p9 = scmp.lt.s32.totalorder %s252_s6, %s2461_s12 }
  0x65   : > { %p2458_p0 = pnand %p2457_p11, %p3102_p13  ;;  %p2464_p3 = scmp.lt.s32.totalorder %s2462_s22, %s2456_s1 }
  0x67   : > { %p2459_p1 = pneg %p2458_p0  ;;  %p2465_p5 = por %p2464_p3, %p2463_p9 }
  0x69   : > { %p2466_p12 = pnand %p2465_p5, %p2459_p1 }
  0x6b   : > { %2469 = shalt.err (!%p2466_p12)
}
  0x6c   : > { %s2592_s28 = smov 64   ;;  %s2593_s30 = smov 4  }
  0x6d   : > { %2040 = dma.hbm_to_vmem [thread:$0]  (%p3102_p13), %s250_s24, 4096, %s252_s6, %s241_s29, %s2592_s28, %s2592_s28, %s2593_s30  }
  0x6e PF: > { %p3103_p4 = scmp.ne.s32.totalorder %s3098_s10, 0 }
  0x6f   : > { %s266_s25 = sand.u32 (!%p3103_p4), 1, %s2560_s21   ;;  %s272_s9 = sand.u32 (!%p3103_p4), 1, %s2552_s19  }
  0x70   : > { %263 = sbr.rel (%p3103_p4) target bundleno = 737 (0x2e1), region = 55  ;;  %s1817_s0 = sshll.u32 (!%p3103_p4), %s266_s25, 5 }
  0x71   : > { %s1818_s3 = sshll.u32 (!%p3103_p4), %s272_s9, 10  ;;  %s2801_s1 = scalar_lea.vmem (!%p3103_p4), [#allocation3], %s1817_s0 }
  0x72   : > { %s273_s7 = scalar_lea.sflag (!%p3103_p4), [#allocation5], %s272_s9  ;;  %s2803_s5 = scalar_lea.vmem (!%p3103_p4), [#allocation4], %s1818_s3 }
  0x73   : > { %p3104_p6 = scmp.ne.s32.totalorder (!%p3103_p4), %s3094_s18, 0 }
  0x75   : > { %2523 = dma.done.wait (%p3104_p6), %s273_s7, 16384  }
  0x76   : > { %2525 = vsyncadd (%p3104_p6), %s273_s7, 4294950912  ;;  %s3105_s11 = sadd.s32 4294967295, %s2584_s27   ;;  %s283_s23 = sand.u32 1, %s2540_s16  }
  0x77   : > { %s281_s10 = sand.u32 1, %s3105_s11   ;;  %s1819_s21 = sshll.u32 %s283_s23, 8 }
  0x78   : > { %s282_s15 = scalar_lea.sflag [#allocation7], %s281_s10  ;;  %s2812_s4 = scalar_lea.vmem [#allocation6], %s1819_s21 }
  0x79   : > { %p3106_p7 = scmp.ne.s32.totalorder %s3097_s8, 0 }
  0x7b   : > { %2527 = dma.done.wait (%p3106_p7), %s282_s15, 4096  }
  0x7c   : > { %2529 = vsyncadd (%p3106_p7), %s282_s15, 4294963200 }
  0x7d   : > { %2531 = dma.done.wait (%p2723_p10), [#allocation7], 16  }
  0x7e   : > { %2533 = vsyncadd (%p2723_p10), [#allocation7], 4294967280  ;;  %s3107_s18 = sld [smem:[#allocation15_spill]] }
  0x7f   : > { %s3108_s20 = sld [smem:[#allocation14_spill]] }
  0x84   : > { %p323_p8 = scmp.eq.s32.totalorder %s3107_s18, 0 }
  0x85   : > { %p324_p2 = scmp.eq.s32.totalorder %s3108_s20, 0 }
  0x87   : > { %p325_p11 = pnand %p324_p2, %p323_p8 }
  0x88   : > { %s3109_s6 = sld [smem:[#allocation25_spill]] (!%p325_p11) }
  0x89   : > { %328 = sbr.rel (%p325_p11) target bundleno = 144 (0x90), region = 75 }
  0x8e   : > { %v1821_v4 = vld [vmem:[#allocation8] ss:$0 sm:$0xff] }
  0x8f   : > { %336 = vst [vmem:[%s3109_s6] sm:$0xff] %v1821_v4  ;;  %337 = vst [vmem:[%s3109_s6 + $0x8] sm:$0xff] %v1821_v4 }
  0x90 PF: > { %s3110_s12 = sld [smem:[#allocation14_spill]] }
  0x96   : > { %p1822_p13 = scmp.ne.s32.totalorder %s3110_s12, 0 }
  0x98   : > { %340 = sbr.rel (%p1822_p13) target bundleno = 162 (0xa2), region = 79 }
  0x9d   : > { %v2594_v5 = vmov 0.0  }
  0x9e   : > { %341 = vst [vmem:[#allocation2 + $0x30] sm:$0xff] %v2594_v5  ;;  %342 = vst [vmem:[#allocation2] sm:$0xff] %v2594_v5 }
  0x9f   : > { %343 = vst [vmem:[#allocation2 + $0x18] sm:$0xff] %v2594_v5  ;;  %344 = vst [vmem:[#allocation2 + $0x10] sm:$0xff] %v2594_v5 }
  0xa0   : > { %345 = vst [vmem:[#allocation2 + $0x8] sm:$0xff] %v2594_v5  ;;  %346 = vst [vmem:[#allocation2 + $0x20] sm:$0xff] %v2594_v5 }
  0xa1   : > { %347 = vst [vmem:[#allocation2 + $0x28] sm:$0xff] %v2594_v5  ;;  %348 = vst [vmem:[#allocation2 + $0x38] sm:$0xff] %v2594_v5 }
  0xa2 PF: > { %v2162_v6 = vld [vmem:[%s2803_s5 + $0xe4] ss:$16 sps:$4 sm:$0xff]   ;;  %v2166_v8 = vld [vmem:[%s2803_s5 + $0xe0] ss:$16 sps:$4 sm:$0xff]   ;;  %v2263_v57 = vld [vmem:[%s2801_s1 + $0xc] ss:$16 sps:$4 sm:$0xff]  }
  0xa3   : > { %v2164_v7 = vld [vmem:[%s2803_s5 + $0x2e4] ss:$16 sps:$4 sm:$0xff]   ;;  %1149 = vmatprep.subr.bf16.mxu0 %v2162_v6  ;;  %v2167_v9 = vld [vmem:[%s2803_s5 + $0x2e0] ss:$16 sps:$4 sm:$0xff]   ;;  %1224 = vmatprep.mubr.bf16.mxu1 %v2263_v57  ;;  %s3111_s13 = sld [smem:[#allocation14_spill]] }
  0xa4   : > { %1192 = vmatprep.subr.bf16.mxu1 %v2164_v7  ;;  %v2168_v10 = vld [vmem:[%s2803_s5 + $0xc4] ss:$16 sps:$4 sm:$0xff]   ;;  %1150 = vmatpush1.bf16.msra.mxu0 %v2166_v8  ;;  %v2172_v12 = vld [vmem:[%s2803_s5 + $0xc0] ss:$16 sps:$4 sm:$0xff]   ;;  %v2266_v8 = vld [vmem:[%s2803_s5 + $0xec] ss:$16 sps:$4 sm:$0xff]  }
  0xa5   : > { %1193 = vmatpush1.bf16.msra.mxu1 %v2167_v9  ;;  %v2170_v11 = vld [vmem:[%s2803_s5 + $0x2c4] ss:$16 sps:$4 sm:$0xff]   ;;  %1151 = vmatprep.subr.bf16.mxu0 %v2168_v10  ;;  %v2173_v13 = vld [vmem:[%s2803_s5 + $0x2c0] ss:$16 sps:$4 sm:$0xff]   ;;  %v2269_v9 = vld [vmem:[%s2803_s5 + $0x2ec] ss:$16 sps:$4 sm:$0xff]  }
  0xa6   : > { %1194 = vmatprep.subr.bf16.mxu1 %v2170_v11  ;;  %v2174_v14 = vld [vmem:[%s2803_s5 + $0xa4] ss:$16 sps:$4 sm:$0xff]   ;;  %v2178_v16 = vld [vmem:[%s2803_s5 + $0xa0] ss:$16 sps:$4 sm:$0xff]   ;;  %v2903_v11 = vld [vmem:[%s2801_s1 + $0x8] ss:$16 sps:$4 sm:$0xff]  }
  0xa7   : > { %v2176_v15 = vld [vmem:[%s2803_s5 + $0x2a4] ss:$16 sps:$4 sm:$0xff]   ;;  %v2179_v17 = vld [vmem:[%s2803_s5 + $0x2a0] ss:$16 sps:$4 sm:$0xff]  }
  0xa8   : > { %1152 = vmatpush1.bf16.msra.mxu0 %v2172_v12  ;;  %v2180_v18 = vld [vmem:[%s2803_s5 + $0x84] ss:$16 sps:$4 sm:$0xff]   ;;  %v2184_v20 = vld [vmem:[%s2803_s5 + $0x80] ss:$16 sps:$4 sm:$0xff]   ;;  %v2264_v12 = vld [vmem:[%s2803_s5 + $0xe8] ss:$16 sps:$4 sm:$0xff]  }
  0xa9   : > { %1195 = vmatpush1.bf16.msra.mxu1 %v2173_v13  ;;  %1153 = vmatprep.subr.bf16.mxu0 %v2174_v14  ;;  %v2182_v19 = vld [vmem:[%s2803_s5 + $0x284] ss:$16 sps:$4 sm:$0xff]   ;;  %v2185_v21 = vld [vmem:[%s2803_s5 + $0x280] ss:$16 sps:$4 sm:$0xff]   ;;  %v2267_v13 = vld [vmem:[%s2803_s5 + $0x2e8] ss:$16 sps:$4 sm:$0xff]  }
  0xaa   : > { %1196 = vmatprep.subr.bf16.mxu1 %v2176_v15  ;;  %v2186_v22 = vld [vmem:[%s2803_s5 + $0x64] ss:$16 sps:$4 sm:$0xff]   ;;  %v2190_v24 = vld [vmem:[%s2803_s5 + $0x60] ss:$16 sps:$4 sm:$0xff]   ;;  %v2272_v14 = vld [vmem:[%s2803_s5 + $0xcc] ss:$16 sps:$4 sm:$0xff]  }
  0xab   : > { %v2188_v23 = vld [vmem:[%s2803_s5 + $0x264] ss:$16 sps:$4 sm:$0xff]   ;;  %v2191_v25 = vld [vmem:[%s2803_s5 + $0x260] ss:$16 sps:$4 sm:$0xff]   ;;  %v2275_v15 = vld [vmem:[%s2803_s5 + $0x2cc] ss:$16 sps:$4 sm:$0xff]  }
  0xac   : > { %1154 = vmatpush1.bf16.msra.mxu0 %v2178_v16  ;;  %v2192_v26 = vld [vmem:[%s2803_s5 + $0x44] ss:$16 sps:$4 sm:$0xff]   ;;  %v2196_v28 = vld [vmem:[%s2803_s5 + $0x40] ss:$16 sps:$4 sm:$0xff]   ;;  %v2270_v16 = vld [vmem:[%s2803_s5 + $0xc8] ss:$16 sps:$4 sm:$0xff]  }
  0xad   : > { %1197 = vmatpush1.bf16.msra.mxu1 %v2179_v17  ;;  %1155 = vmatprep.subr.bf16.mxu0 %v2180_v18  ;;  %v2194_v27 = vld [vmem:[%s2803_s5 + $0x244] ss:$16 sps:$4 sm:$0xff]   ;;  %v2197_v29 = vld [vmem:[%s2803_s5 + $0x240] ss:$16 sps:$4 sm:$0xff]   ;;  %v2273_v17 = vld [vmem:[%s2803_s5 + $0x2c8] ss:$16 sps:$4 sm:$0xff]  }
  0xae   : > { %1198 = vmatprep.subr.bf16.mxu1 %v2182_v19  ;;  %v2198_v30 = vld [vmem:[%s2803_s5 + $0x24] ss:$16 sps:$4 sm:$0xff]   ;;  %v2202_v32 = vld [vmem:[%s2803_s5 + $0x20] ss:$16 sps:$4 sm:$0xff]   ;;  %v2278_v18 = vld [vmem:[%s2803_s5 + $0xac] ss:$16 sps:$4 sm:$0xff]  }
  0xaf   : > { %v2200_v31 = vld [vmem:[%s2803_s5 + $0x224] ss:$16 sps:$4 sm:$0xff]   ;;  %v2203_v33 = vld [vmem:[%s2803_s5 + $0x220] ss:$16 sps:$4 sm:$0xff]   ;;  %v2281_v19 = vld [vmem:[%s2803_s5 + $0x2ac] ss:$16 sps:$4 sm:$0xff]  }
  0xb0   : > { %1156 = vmatpush1.bf16.msra.mxu0 %v2184_v20  ;;  %v2204_v34 = vld [vmem:[%s2803_s5 + $0x4] ss:$16 sps:$4 sm:$0xff]   ;;  %v2208_v36 = vld [vmem:[%s2803_s5] ss:$16 sps:$4 sm:$0xff]   ;;  %v2276_v20 = vld [vmem:[%s2803_s5 + $0xa8] ss:$16 sps:$4 sm:$0xff]  }
  0xb1   : > { %1199 = vmatpush1.bf16.msra.mxu1 %v2185_v21  ;;  %1157 = vmatprep.subr.bf16.mxu0 %v2186_v22  ;;  %v2206_v35 = vld [vmem:[%s2803_s5 + $0x204] ss:$16 sps:$4 sm:$0xff]   ;;  %v2209_v37 = vld [vmem:[%s2803_s5 + $0x200] ss:$16 sps:$4 sm:$0xff]   ;;  %v2279_v21 = vld [vmem:[%s2803_s5 + $0x2a8] ss:$16 sps:$4 sm:$0xff]  }
  0xb2   : > { %1200 = vmatprep.subr.bf16.mxu1 %v2188_v23  ;;  %v2210_v38 = vld [vmem:[%s2803_s5 + $0x1e4] ss:$16 sps:$4 sm:$0xff]   ;;  %v2214_v40 = vld [vmem:[%s2803_s5 + $0x1e0] ss:$16 sps:$4 sm:$0xff]   ;;  %v2284_v22 = vld [vmem:[%s2803_s5 + $0x8c] ss:$16 sps:$4 sm:$0xff]  }
  0xb3   : > { %v2212_v39 = vld [vmem:[%s2803_s5 + $0x3e4] ss:$16 sps:$4 sm:$0xff]   ;;  %v2215_v41 = vld [vmem:[%s2803_s5 + $0x3e0] ss:$16 sps:$4 sm:$0xff]   ;;  %v2287_v23 = vld [vmem:[%s2803_s5 + $0x28c] ss:$16 sps:$4 sm:$0xff]  }
  0xb4   : > { %1158 = vmatpush1.bf16.msra.mxu0 %v2190_v24  ;;  %v2216_v42 = vld [vmem:[%s2803_s5 + $0x1c4] ss:$16 sps:$4 sm:$0xff]   ;;  %v2220_v44 = vld [vmem:[%s2803_s5 + $0x1c0] ss:$16 sps:$4 sm:$0xff]   ;;  %v2282_v24 = vld [vmem:[%s2803_s5 + $0x88] ss:$16 sps:$4 sm:$0xff]  }
  0xb5   : > { %1201 = vmatpush1.bf16.msra.mxu1 %v2191_v25  ;;  %1159 = vmatprep.subr.bf16.mxu0 %v2192_v26  ;;  %v2218_v43 = vld [vmem:[%s2803_s5 + $0x3c4] ss:$16 sps:$4 sm:$0xff]   ;;  %v2221_v45 = vld [vmem:[%s2803_s5 + $0x3c0] ss:$16 sps:$4 sm:$0xff]   ;;  %v2285_v25 = vld [vmem:[%s2803_s5 + $0x288] ss:$16 sps:$4 sm:$0xff]  }
  0xb6   : > { %1202 = vmatprep.subr.bf16.mxu1 %v2194_v27  ;;  %v2222_v46 = vld [vmem:[%s2803_s5 + $0x1a4] ss:$16 sps:$4 sm:$0xff]   ;;  %v2226_v48 = vld [vmem:[%s2803_s5 + $0x1a0] ss:$16 sps:$4 sm:$0xff]   ;;  %v2290_v26 = vld [vmem:[%s2803_s5 + $0x6c] ss:$16 sps:$4 sm:$0xff]  }
  0xb7   : > { %v2224_v47 = vld [vmem:[%s2803_s5 + $0x3a4] ss:$16 sps:$4 sm:$0xff]   ;;  %v2227_v49 = vld [vmem:[%s2803_s5 + $0x3a0] ss:$16 sps:$4 sm:$0xff]   ;;  %v2293_v27 = vld [vmem:[%s2803_s5 + $0x26c] ss:$16 sps:$4 sm:$0xff]  }
  0xb8   : > { %1160 = vmatpush1.bf16.msra.mxu0 %v2196_v28  ;;  %v2228_v50 = vld [vmem:[%s2803_s5 + $0x184] ss:$16 sps:$4 sm:$0xff]   ;;  %v2232_v52 = vld [vmem:[%s2803_s5 + $0x180] ss:$16 sps:$4 sm:$0xff]   ;;  %v2288_v28 = vld [vmem:[%s2803_s5 + $0x68] ss:$16 sps:$4 sm:$0xff]  }
  0xb9   : > { %1203 = vmatpush1.bf16.msra.mxu1 %v2197_v29  ;;  %1161 = vmatprep.subr.bf16.mxu0 %v2198_v30  ;;  %v2230_v51 = vld [vmem:[%s2803_s5 + $0x384] ss:$16 sps:$4 sm:$0xff]   ;;  %v2233_v53 = vld [vmem:[%s2803_s5 + $0x380] ss:$16 sps:$4 sm:$0xff]   ;;  %v2291_v29 = vld [vmem:[%s2803_s5 + $0x268] ss:$16 sps:$4 sm:$0xff]  }
  0xba   : > { %1204 = vmatprep.subr.bf16.mxu1 %v2200_v31  ;;  %v2234_v54 = vld [vmem:[%s2803_s5 + $0x164] ss:$16 sps:$4 sm:$0xff]   ;;  %v2238_v58 = vld [vmem:[%s2803_s5 + $0x160] ss:$16 sps:$4 sm:$0xff]   ;;  %v2296_v30 = vld [vmem:[%s2803_s5 + $0x4c] ss:$16 sps:$4 sm:$0xff]  }
  0xbb   : > { %v2260_v55 = vld [vmem:[%s2801_s1 + $0x4] ss:$16 sps:$4 sm:$0xff]   ;;  %v2239_v59 = vld [vmem:[%s2803_s5 + $0x360] ss:$16 sps:$4 sm:$0xff]   ;;  %v2299_v31 = vld [vmem:[%s2803_s5 + $0x24c] ss:$16 sps:$4 sm:$0xff]  }
  0xbc   : > { %1162 = vmatpush1.bf16.msra.mxu0 %v2202_v32  ;;  %v2236_v56 = vld [vmem:[%s2803_s5 + $0x364] ss:$16 sps:$4 sm:$0xff]   ;;  %1181 = vmatprep.mubr.bf16.mxu0 %v2260_v55  ;;  %v2244_v62 = vld [vmem:[%s2803_s5 + $0x140] ss:$16 sps:$4 sm:$0xff]   ;;  %v2294_v32 = vld [vmem:[%s2803_s5 + $0x48] ss:$16 sps:$4 sm:$0xff]  }
  0xbd   : > { %1205 = vmatpush1.bf16.msra.mxu1 %v2203_v33  ;;  %1163 = vmatprep.subr.bf16.mxu0 %v2204_v34  ;;  %v2240_v60 = vld [vmem:[%s2803_s5 + $0x144] ss:$16 sps:$4 sm:$0xff]   ;;  %v2245_v63 = vld [vmem:[%s2803_s5 + $0x340] ss:$16 sps:$4 sm:$0xff]   ;;  %v2297_v33 = vld [vmem:[%s2803_s5 + $0x248] ss:$16 sps:$4 sm:$0xff]  }
  0xbe   : > { %1206 = vmatprep.subr.bf16.mxu1 %v2206_v35  ;;  %v2242_v61 = vld [vmem:[%s2803_s5 + $0x344] ss:$16 sps:$4 sm:$0xff]   ;;  %v2250_v2 = vld [vmem:[%s2803_s5 + $0x120] ss:$16 sps:$4 sm:$0xff]   ;;  %v2302_v34 = vld [vmem:[%s2803_s5 + $0x2c] ss:$16 sps:$4 sm:$0xff]  }
  0xbf   : > { %v2246_v0 = vld [vmem:[%s2803_s5 + $0x124] ss:$16 sps:$4 sm:$0xff]   ;;  %v2251_v3 = vld [vmem:[%s2803_s5 + $0x320] ss:$16 sps:$4 sm:$0xff]   ;;  %v2305_v35 = vld [vmem:[%s2803_s5 + $0x22c] ss:$16 sps:$4 sm:$0xff]  }
  0xc0   : > { %1164 = vmatpush1.bf16.msra.mxu0 %v2208_v36  ;;  %v2248_v1 = vld [vmem:[%s2803_s5 + $0x324] ss:$16 sps:$4 sm:$0xff]   ;;  %v2256_v6 = vld [vmem:[%s2803_s5 + $0x100] ss:$16 sps:$4 sm:$0xff]   ;;  %v2300_v36 = vld [vmem:[%s2803_s5 + $0x28] ss:$16 sps:$4 sm:$0xff]  }
  0xc1   : > { %1207 = vmatpush1.bf16.msra.mxu1 %v2209_v37  ;;  %1165 = vmatprep.subr.bf16.mxu0 %v2210_v38  ;;  %v2252_v4 = vld [vmem:[%s2803_s5 + $0x104] ss:$16 sps:$4 sm:$0xff]   ;;  %v2257_v7 = vld [vmem:[%s2803_s5 + $0x300] ss:$16 sps:$4 sm:$0xff]   ;;  %v2303_v37 = vld [vmem:[%s2803_s5 + $0x228] ss:$16 sps:$4 sm:$0xff]  }
  0xc2   : > { %1208 = vmatprep.subr.bf16.mxu1 %v2212_v39  ;;  %v2254_v5 = vld [vmem:[%s2803_s5 + $0x304] ss:$16 sps:$4 sm:$0xff]   ;;  %v2900_v10 = vld [vmem:[%s2801_s1] ss:$16 sps:$4 sm:$0xff]   ;;  %v2308_v38 = vld [vmem:[%s2803_s5 + $0xc] ss:$16 sps:$4 sm:$0xff]  }
  0xc3   : > { %v2311_v39 = vld [vmem:[%s2803_s5 + $0x20c] ss:$16 sps:$4 sm:$0xff]   ;;  %p1955_p10 = scmp.ne.s32.totalorder %s3111_s13, 1 }
  0xc4   : > { %1166 = vmatpush2.bf16.msra.mxu0 %v2214_v40  ;;  %v2306_v40 = vld [vmem:[%s2803_s5 + $0x8] ss:$16 sps:$4 sm:$0xff]   ;;  %s3112_s30 = sld [smem:[#allocation25_spill]] (!%p1955_p10) }
  0xc5   : > { %1209 = vmatpush2.bf16.msra.mxu1 %v2215_v41  ;;  %1167 = vmatprep.subr.bf16.mxu0 %v2216_v42  ;;  %v2309_v41 = vld [vmem:[%s2803_s5 + $0x208] ss:$16 sps:$4 sm:$0xff]   ;;  %v2314_v42 = vld [vmem:[%s2803_s5 + $0x1ec] ss:$16 sps:$4 sm:$0xff]  }
  0xc6   : > { %1210 = vmatprep.subr.bf16.mxu1 %v2218_v43  ;;  %v2317_v43 = vld [vmem:[%s2803_s5 + $0x3ec] ss:$16 sps:$4 sm:$0xff]  }
  0xc8   : > { %1168 = vmatpush2.bf16.msra.mxu0 %v2220_v44  ;;  %v2312_v44 = vld [vmem:[%s2803_s5 + $0x1e8] ss:$16 sps:$4 sm:$0xff]  }
  0xc9   : > { %1211 = vmatpush2.bf16.msra.mxu1 %v2221_v45  ;;  %1169 = vmatprep.subr.bf16.mxu0 %v2222_v46  ;;  %v2315_v45 = vld [vmem:[%s2803_s5 + $0x3e8] ss:$16 sps:$4 sm:$0xff]   ;;  %v2320_v46 = vld [vmem:[%s2803_s5 + $0x1cc] ss:$16 sps:$4 sm:$0xff]  }
  0xca   : > { %1212 = vmatprep.subr.bf16.mxu1 %v2224_v47  ;;  %v2323_v47 = vld [vmem:[%s2803_s5 + $0x3cc] ss:$16 sps:$4 sm:$0xff]  }
  0xcc   : > { %1170 = vmatpush2.bf16.msra.mxu0 %v2226_v48  ;;  %v2318_v48 = vld [vmem:[%s2803_s5 + $0x1c8] ss:$16 sps:$4 sm:$0xff]  }
  0xcd   : > { %1213 = vmatpush2.bf16.msra.mxu1 %v2227_v49  ;;  %1171 = vmatprep.subr.bf16.mxu0 %v2228_v50  ;;  %v2321_v49 = vld [vmem:[%s2803_s5 + $0x3c8] ss:$16 sps:$4 sm:$0xff]   ;;  %v2326_v50 = vld [vmem:[%s2803_s5 + $0x1ac] ss:$16 sps:$4 sm:$0xff]  }
  0xce   : > { %1214 = vmatprep.subr.bf16.mxu1 %v2230_v51  ;;  %v2329_v51 = vld [vmem:[%s2803_s5 + $0x3ac] ss:$16 sps:$4 sm:$0xff]  }
  0xd0   : > { %1172 = vmatpush2.bf16.msra.mxu0 %v2232_v52  ;;  %v2324_v52 = vld [vmem:[%s2803_s5 + $0x1a8] ss:$16 sps:$4 sm:$0xff]  }
  0xd1   : > { %1215 = vmatpush2.bf16.msra.mxu1 %v2233_v53  ;;  %1173 = vmatprep.subr.bf16.mxu0 %v2234_v54  ;;  %v2327_v53 = vld [vmem:[%s2803_s5 + $0x3a8] ss:$16 sps:$4 sm:$0xff]   ;;  %v2332_v54 = vld [vmem:[%s2803_s5 + $0x18c] ss:$16 sps:$4 sm:$0xff]  }
  0xd2   : > { %1216 = vmatprep.subr.bf16.mxu1 %v2236_v56  ;;  %v2330_v56 = vld [vmem:[%s2803_s5 + $0x188] ss:$16 sps:$4 sm:$0xff]  }
  0xd4   : > { %1174 = vmatpush2.bf16.msra.mxu0 %v2238_v58  ;;  %v2338_v58 = vld [vmem:[%s2803_s5 + $0x16c] ss:$16 sps:$4 sm:$0xff]  }
  0xd5   : > { %1217 = vmatpush2.bf16.msra.mxu1 %v2239_v59  ;;  %1175 = vmatprep.subr.bf16.mxu0 %v2240_v60  ;;  %v2341_v59 = vld [vmem:[%s2803_s5 + $0x36c] ss:$16 sps:$4 sm:$0xff]   ;;  %v2336_v60 = vld [vmem:[%s2803_s5 + $0x168] ss:$16 sps:$4 sm:$0xff]  }
  0xd6   : > { %1218 = vmatprep.subr.bf16.mxu1 %v2242_v61  ;;  %v2339_v61 = vld [vmem:[%s2803_s5 + $0x368] ss:$16 sps:$4 sm:$0xff]  }
  0xd8   : > { %1176 = vmatpush2.bf16.msra.mxu0 %v2244_v62  ;;  %v2344_v62 = vld [vmem:[%s2803_s5 + $0x14c] ss:$16 sps:$4 sm:$0xff]  }
  0xd9   : > { %1219 = vmatpush2.bf16.msra.mxu1 %v2245_v63  ;;  %1177 = vmatprep.subr.bf16.mxu0 %v2246_v0  ;;  %v2347_v63 = vld [vmem:[%s2803_s5 + $0x34c] ss:$16 sps:$4 sm:$0xff]   ;;  %v2342_v0 = vld [vmem:[%s2803_s5 + $0x148] ss:$16 sps:$4 sm:$0xff]  }
  0xda   : > { %1220 = vmatprep.subr.bf16.mxu1 %v2248_v1  ;;  %v2345_v1 = vld [vmem:[%s2803_s5 + $0x348] ss:$16 sps:$4 sm:$0xff]  }
  0xdc   : > { %1178 = vmatpush2.bf16.msra.mxu0 %v2250_v2  ;;  %v2350_v2 = vld [vmem:[%s2803_s5 + $0x12c] ss:$16 sps:$4 sm:$0xff]  }
  0xdd   : > { %1221 = vmatpush2.bf16.msra.mxu1 %v2251_v3  ;;  %1179 = vmatprep.subr.bf16.mxu0 %v2252_v4  ;;  %v2353_v3 = vld [vmem:[%s2803_s5 + $0x32c] ss:$16 sps:$4 sm:$0xff]   ;;  %v2348_v4 = vld [vmem:[%s2803_s5 + $0x128] ss:$16 sps:$4 sm:$0xff]  }
  0xde   : > { %1222 = vmatprep.subr.bf16.mxu1 %v2254_v5  ;;  %v2351_v5 = vld [vmem:[%s2803_s5 + $0x328] ss:$16 sps:$4 sm:$0xff]  }
  0xe0   : > { %1180 = vmatpush2.bf16.msra.mxu0 %v2256_v6  ;;  %v2356_v6 = vld [vmem:[%s2803_s5 + $0x10c] ss:$16 sps:$4 sm:$0xff]  }
  0xe1   : > { %1223 = vmatpush2.bf16.msra.mxu1 %v2257_v7  ;;  %1235 = vmatprep.subr.bf16.mxu0 %v2266_v8  ;;  %v2359_v7 = vld [vmem:[%s2803_s5 + $0x30c] ss:$16 sps:$4 sm:$0xff]   ;;  %v2354_v8 = vld [vmem:[%s2803_s5 + $0x108] ss:$16 sps:$4 sm:$0xff]  }
  0xe2   : > { %1278 = vmatprep.subr.bf16.mxu1 %v2269_v9  ;;  %v2357_v9 = vld [vmem:[%s2803_s5 + $0x308] ss:$16 sps:$4 sm:$0xff]  }
  0xe3   : > { %1182 = vmatmul.mubr.bf16.vlgmr.msra.gmra.mxu0 %v2900_v10 }
  0xe4   : > { %1225 = vmatmul.mubr.bf16.vlgmr.msra.gmra.mxu1 %v2903_v11  ;;  %1236 = vmatpush1.bf16.msra.mxu0 %v2264_v12 }
  0xe5   : > { %1279 = vmatpush1.bf16.msra.mxu1 %v2267_v13  ;;  %1237 = vmatprep.subr.bf16.mxu0 %v2272_v14  ;;  %v349_v13 = vld [vmem:[#allocation2 + $0x30] sm:$0xff] }
  0xe6   : > { %1280 = vmatprep.subr.bf16.mxu1 %v2275_v15  ;;  %1267 = vmatprep.mubr.bf16.mxu0 %v2260_v55  ;;  %v2335_v55 = vld [vmem:[%s2803_s5 + $0x38c] ss:$16 sps:$4 sm:$0xff]  }
  0xe7   : > { %1310 = vmatprep.mubr.bf16.mxu1 %v2263_v57  ;;  %v2333_v57 = vld [vmem:[%s2803_s5 + $0x388] ss:$16 sps:$4 sm:$0xff]  }
  0xe8   : > { %1238 = vmatpush1.bf16.msra.mxu0 %v2270_v16 }
  0xe9   : > { %1281 = vmatpush1.bf16.msra.mxu1 %v2273_v17  ;;  %1239 = vmatprep.subr.bf16.mxu0 %v2278_v18  ;;  %v350_v17 = vld [vmem:[#allocation2] sm:$0xff] }
  0xea   : > { %1282 = vmatprep.subr.bf16.mxu1 %v2281_v19 }
  0xec   : > { %1240 = vmatpush1.bf16.msra.mxu0 %v2276_v20 }
  0xed   : > { %1283 = vmatpush1.bf16.msra.mxu1 %v2279_v21  ;;  %1241 = vmatprep.subr.bf16.mxu0 %v2284_v22  ;;  %v353_v22 = vld [vmem:[#allocation2 + $0x8] sm:$0xff] }
  0xee   : > { %1284 = vmatprep.subr.bf16.mxu1 %v2287_v23 }
  0xf0   : > { %1242 = vmatpush1.bf16.msra.mxu0 %v2282_v24 }
  0xf1   : > { %1285 = vmatpush1.bf16.msra.mxu1 %v2285_v25  ;;  %1243 = vmatprep.subr.bf16.mxu0 %v2290_v26 }
  0xf2   : > { %1286 = vmatprep.subr.bf16.mxu1 %v2293_v27  ;;  %v354_v27 = vld [vmem:[#allocation2 + $0x20] sm:$0xff] }
  0xf4   : > { %1244 = vmatpush1.bf16.msra.mxu0 %v2288_v28 }
  0xf5   : > { %1287 = vmatpush1.bf16.msra.mxu1 %v2291_v29  ;;  %1245 = vmatprep.subr.bf16.mxu0 %v2296_v30 }
  0xf6   : > { %1288 = vmatprep.subr.bf16.mxu1 %v2299_v31  ;;  %v351_v31 = vld [vmem:[#allocation2 + $0x18] sm:$0xff] }
  0xf8   : > { %1246 = vmatpush1.bf16.msra.mxu0 %v2294_v32 }
  0xf9   : > { %1289 = vmatpush1.bf16.msra.mxu1 %v2297_v33  ;;  %1247 = vmatprep.subr.bf16.mxu0 %v2302_v34 }
  0xfa   : > { %1290 = vmatprep.subr.bf16.mxu1 %v2305_v35  ;;  %v352_v35 = vld [vmem:[#allocation2 + $0x10] sm:$0xff] }
  0xfc   : > { %1248 = vmatpush1.bf16.msra.mxu0 %v2300_v36 }
  0xfd   : > { %1291 = vmatpush1.bf16.msra.mxu1 %v2303_v37  ;;  %1249 = vmatprep.subr.bf16.mxu0 %v2308_v38 }
  0xfe   : > { %1292 = vmatprep.subr.bf16.mxu1 %v2311_v39 }
 0x100   : > { %1250 = vmatpush1.bf16.msra.mxu0 %v2306_v40  ;;  %v355_v40 = vld [vmem:[#allocation2 + $0x28] sm:$0xff] }
 0x101   : > { %1293 = vmatpush1.bf16.msra.mxu1 %v2309_v41  ;;  %1251 = vmatprep.subr.bf16.mxu0 %v2314_v42 }
 0x102   : > { %1294 = vmatprep.subr.bf16.mxu1 %v2317_v43 }
 0x104   : > { %1252 = vmatpush2.bf16.msra.mxu0 %v2312_v44 }
 0x105   : > { %1295 = vmatpush2.bf16.msra.mxu1 %v2315_v45  ;;  %1253 = vmatprep.subr.bf16.mxu0 %v2320_v46  ;;  %v356_v45 = vld [vmem:[#allocation2 + $0x38] sm:$0xff] }
 0x106   : > { %1296 = vmatprep.subr.bf16.mxu1 %v2323_v47 }
 0x108   : > { %1254 = vmatpush2.bf16.msra.mxu0 %v2318_v48 }
 0x109   : > { %1297 = vmatpush2.bf16.msra.mxu1 %v2321_v49  ;;  %1255 = vmatprep.subr.bf16.mxu0 %v2326_v50 }
 0x10a   : > { %1298 = vmatprep.subr.bf16.mxu1 %v2329_v51 }
 0x10c   : > { %1256 = vmatpush2.bf16.msra.mxu0 %v2324_v52 }
 0x10d   : > { %1299 = vmatpush2.bf16.msra.mxu1 %v2327_v53  ;;  %1257 = vmatprep.subr.bf16.mxu0 %v2332_v54 }
 0x10e   : > { %1300 = vmatprep.subr.bf16.mxu1 %v2335_v55 }
 0x110   : > { %1258 = vmatpush2.bf16.msra.mxu0 %v2330_v56 }
 0x111   : > { %1301 = vmatpush2.bf16.msra.mxu1 %v2333_v57  ;;  %1259 = vmatprep.subr.bf16.mxu0 %v2338_v58 }
 0x112   : > { %1302 = vmatprep.subr.bf16.mxu1 %v2341_v59 }
 0x114   : > { %1260 = vmatpush2.bf16.msra.mxu0 %v2336_v60 }
 0x115   : > { %1303 = vmatpush2.bf16.msra.mxu1 %v2339_v61  ;;  %1261 = vmatprep.subr.bf16.mxu0 %v2344_v62 }
 0x116   : > { %1304 = vmatprep.subr.bf16.mxu1 %v2347_v63 }
 0x118   : > { %1262 = vmatpush2.bf16.msra.mxu0 %v2342_v0 }
 0x119   : > { %1305 = vmatpush2.bf16.msra.mxu1 %v2345_v1  ;;  %1263 = vmatprep.subr.bf16.mxu0 %v2350_v2 }
 0x11a   : > { %1306 = vmatprep.subr.bf16.mxu1 %v2353_v3 }
 0x11c   : > { %1264 = vmatpush2.bf16.msra.mxu0 %v2348_v4 }
 0x11d   : > { %1307 = vmatpush2.bf16.msra.mxu1 %v2351_v5  ;;  %1265 = vmatprep.subr.bf16.mxu0 %v2356_v6 }
 0x11e   : > { %1308 = vmatprep.subr.bf16.mxu1 %v2359_v7 }
 0x120   : > { %1266 = vmatpush2.bf16.msra.mxu0 %v2354_v8 }
 0x121   : > { %1309 = vmatpush2.bf16.msra.mxu1 %v2357_v9 }
 0x123   : > { %1268 = vmatmul.mubr.bf16.vlgmr.msra.gmra.mxu0 %v2900_v10 }
 0x124   : > { %1311 = vmatmul.mubr.bf16.vlgmr.msra.gmra.mxu1 %v2903_v11 }
 0x1a3   : > { %v1183_v12 = vpop.f32.mrf.mxu0 }
 0x1a4   : > { %v1226_v14 = vpop.f32.mrf.mxu1 }
 0x1a5   : > { %v1227_v15 = vadd.f32 %v1226_v14, %v1183_v12  ;;  %v1185_v16 = vpop.f32.mrf.mxu0 }
 0x1a6   : > { %v1228_v18 = vpop.f32.mrf.mxu1 }
 0x1a7   : > { %v1321_v19 = vadd.f32 %v1227_v15, %v349_v13  ;;  %v1229_v20 = vadd.f32 %v1228_v18, %v1185_v16  ;;  %v1187_v21 = vpop.f32.mrf.mxu0 }
 0x1a8   : > { %v1230_v23 = vpop.f32.mrf.mxu1 }
 0x1a9   : > { %1329 = vst [vmem:[#allocation2 + $0x30] sm:$0xff] %v1321_v19  ;;  %v1322_v24 = vadd.f32 %v1229_v20, %v350_v17  ;;  %v1231_v25 = vadd.f32 %v1230_v23, %v1187_v21  ;;  %v1189_v26 = vpop.f32.mrf.mxu0 }
 0x1aa   : > { %v1232_v10 = vpop.f32.mrf.mxu1 }
 0x1ab   : > { %1330 = vst [vmem:[#allocation2] sm:$0xff] %v1322_v24  ;;  %v1325_v11 = vadd.f32 %v1231_v25, %v353_v22  ;;  %v1233_v28 = vadd.f32 %v1232_v10, %v1189_v26 }
 0x1ad   : > { %1333 = vst [vmem:[#allocation2 + $0x8] sm:$0xff] %v1325_v11  ;;  %v1326_v29 = vadd.f32 %v1233_v28, %v354_v27 }
 0x1af   : > { %1334 = vst [vmem:[#allocation2 + $0x20] sm:$0xff] %v1326_v29 }
 0x1e3   : > { %v1269_v30 = vpop.f32.mrf.mxu0 }
 0x1e4   : > { %v1312_v32 = vpop.f32.mrf.mxu1 }
 0x1e5   : > { %v1313_v33 = vadd.f32 %v1312_v32, %v1269_v30  ;;  %v1271_v34 = vpop.f32.mrf.mxu0 }
 0x1e6   : > { %v1314_v36 = vpop.f32.mrf.mxu1 }
 0x1e7   : > { %v1323_v37 = vadd.f32 %v1313_v33, %v351_v31  ;;  %v1315_v38 = vadd.f32 %v1314_v36, %v1271_v34  ;;  %v1273_v39 = vpop.f32.mrf.mxu0 }
 0x1e8   : > { %v1316_v41 = vpop.f32.mrf.mxu1 }
 0x1e9   : > { %1331 = vst [vmem:[#allocation2 + $0x18] sm:$0xff] %v1323_v37  ;;  %v1324_v42 = vadd.f32 %v1315_v38, %v352_v35  ;;  %v1317_v43 = vadd.f32 %v1316_v41, %v1273_v39  ;;  %v1275_v44 = vpop.f32.mrf.mxu0 }
 0x1ea   : > { %v1318_v46 = vpop.f32.mrf.mxu1 }
 0x1eb   : > { %1332 = vst [vmem:[#allocation2 + $0x10] sm:$0xff] %v1324_v42  ;;  %v1327_v47 = vadd.f32 %v1317_v43, %v355_v40  ;;  %v1319_v48 = vadd.f32 %v1318_v46, %v1275_v44  ;;  %1340 = sbr.rel (%p1955_p10) target bundleno = 737 (0x2e1), region = 83 }
 0x1ed   : > { %1335 = vst [vmem:[#allocation2 + $0x28] sm:$0xff] %v1327_v47  ;;  %v1328_v49 = vadd.f32 %v1319_v48, %v356_v45 }
 0x1ef   : > { %1336 = vst [vmem:[#allocation2 + $0x38] sm:$0xff] %v1328_v49 }
 0x1f0   : > { %v2360_v50 = vld [vmem:[%s2812_s4 + $0x78] sm:$0xff]   ;;  %v2364_v54 = vld [vmem:[%s2812_s4 + $0x70] sm:$0xff]   ;;  %v2368_v58 = vld [vmem:[%s2812_s4 + $0x68] sm:$0xff]  }
 0x1f1   : > { %v2361_v51 = vld [vmem:[%s2812_s4 + $0xf8] sm:$0xff]   ;;  %1993 = vmatprep.subr.bf16.mxu0 %v2360_v50  ;;  %v2365_v55 = vld [vmem:[%s2812_s4 + $0xf0] sm:$0xff]   ;;  %v2369_v59 = vld [vmem:[%s2812_s4 + $0xe8] sm:$0xff]  }
 0x1f2   : > { %v2362_v52 = vld [vmem:[%s2812_s4 + $0x38] sm:$0xff]   ;;  %2015 = vmatprep.subr.bf16.mxu1 %v2361_v51  ;;  %v2366_v56 = vld [vmem:[%s2812_s4 + $0x30] sm:$0xff]   ;;  %v2370_v60 = vld [vmem:[%s2812_s4 + $0x28] sm:$0xff]  }
 0x1f3   : > { %v2363_v53 = vld [vmem:[%s2812_s4 + $0xb8] sm:$0xff]   ;;  %1994 = vmatpush3.bf16.msra.mxu0 %v2362_v52  ;;  %v2367_v57 = vld [vmem:[%s2812_s4 + $0xb0] sm:$0xff]   ;;  %v2371_v61 = vld [vmem:[%s2812_s4 + $0xa8] sm:$0xff]  }
 0x1f4   : > { %2016 = vmatpush3.bf16.msra.mxu1 %v2363_v53  ;;  %1995 = vmatprep.subr.bf16.mxu0 %v2364_v54  ;;  %v2372_v62 = vld [vmem:[%s2812_s4 + $0x60] sm:$0xff]   ;;  %v2376_v2 = vld [vmem:[%s2812_s4 + $0x58] sm:$0xff]   ;;  %v2380_v6 = vld [vmem:[%s2812_s4 + $0x50] sm:$0xff]  }
 0x1f5   : > { %2017 = vmatprep.subr.bf16.mxu1 %v2365_v55  ;;  %v2373_v63 = vld [vmem:[%s2812_s4 + $0xe0] sm:$0xff]   ;;  %v2377_v3 = vld [vmem:[%s2812_s4 + $0xd8] sm:$0xff]   ;;  %v2381_v7 = vld [vmem:[%s2812_s4 + $0xd0] sm:$0xff]  }
 0x1f6   : > { %v2374_v0 = vld [vmem:[%s2812_s4 + $0x20] sm:$0xff]   ;;  %v2378_v4 = vld [vmem:[%s2812_s4 + $0x18] sm:$0xff]   ;;  %v2382_v8 = vld [vmem:[%s2812_s4 + $0x10] sm:$0xff]  }
 0x1f7   : > { %1996 = vmatpush3.bf16.msra.mxu0 %v2366_v56  ;;  %v2375_v1 = vld [vmem:[%s2812_s4 + $0xa0] sm:$0xff]   ;;  %v2379_v5 = vld [vmem:[%s2812_s4 + $0x98] sm:$0xff]   ;;  %v2383_v9 = vld [vmem:[%s2812_s4 + $0x90] sm:$0xff]  }
 0x1f8   : > { %2018 = vmatpush3.bf16.msra.mxu1 %v2367_v57  ;;  %1997 = vmatprep.subr.bf16.mxu0 %v2368_v58  ;;  %v2384_v12 = vld [vmem:[%s2812_s4 + $0x48] sm:$0xff]   ;;  %v2388_v16 = vld [vmem:[%s2812_s4 + $0x40] sm:$0xff]   ;;  %v1346_v22 = vld [vmem:[#allocation2 + $0x10] sm:$0xff] }
 0x1f9   : > { %2019 = vmatprep.subr.bf16.mxu1 %v2369_v59  ;;  %v2385_v13 = vld [vmem:[%s2812_s4 + $0xc8] sm:$0xff]   ;;  %v2389_v17 = vld [vmem:[%s2812_s4 + $0xc0] sm:$0xff]   ;;  %v1350_v24 = vld [vmem:[#allocation2 + $0x38] sm:$0xff] }
 0x1fa   : > { %v2386_v14 = vld [vmem:[%s2812_s4 + $0x8] sm:$0xff]   ;;  %v2390_v18 = vld [vmem:[%s2812_s4] sm:$0xff]   ;;  %v1343_v25 = vld [vmem:[#allocation2 + $0x30] sm:$0xff]  ;;  %v1354_v27 = vpack.c.bf16 %v1350_v24, %v1346_v22 }
 0x1fb   : > { %1998 = vmatpush3.bf16.msra.mxu0 %v2370_v60  ;;  %v2387_v15 = vld [vmem:[%s2812_s4 + $0x88] sm:$0xff]   ;;  %v2391_v19 = vld [vmem:[%s2812_s4 + $0x80] sm:$0xff]   ;;  %v1345_v11 = vld [vmem:[#allocation2 + $0x18] sm:$0xff] }
 0x1fc   : > { %2020 = vmatpush3.bf16.msra.mxu1 %v2371_v61  ;;  %1999 = vmatprep.subr.bf16.mxu0 %v2372_v62  ;;  %v1344_v20 = vld [vmem:[#allocation2] sm:$0xff]  ;;  %v1347_v26 = vld [vmem:[#allocation2 + $0x8] sm:$0xff] }
 0x1fd   : > { %2021 = vmatprep.subr.bf16.mxu1 %v2373_v63  ;;  %v1348_v21 = vld [vmem:[#allocation2 + $0x20] sm:$0xff]  ;;  %v1351_v10 = vpack.c.bf16 %v1347_v26, %v1343_v25  ;;  %v1349_v28 = vld [vmem:[#allocation2 + $0x28] sm:$0xff]  ;;  %1684 = vmatprep.mubr.bf16.mxu1 %v1354_v27 }
 0x1fe   : > { %v1352_v23 = vpack.c.bf16 %v1348_v21, %v1344_v20  ;;  %v1353_v29 = vpack.c.bf16 %v1349_v28, %v1345_v11  ;;  %v1341_v37 = vld [vmem:[%s3112_s30] sm:$0xff]  ;;  %v1342_v45 = vld [vmem:[%s3112_s30 + $0x8] sm:$0xff] }
 0x1ff   : > { %2000 = vmatpush3.bf16.msra.mxu0 %v2374_v0 }
 0x200   : > { %2022 = vmatpush3.bf16.msra.mxu1 %v2375_v1  ;;  %2001 = vmatprep.subr.bf16.mxu0 %v2376_v2 }
 0x201   : > { %2023 = vmatprep.subr.bf16.mxu1 %v2377_v3  ;;  %1643 = vmatprep.mubr.bf16.mxu0 %v1352_v23 }
 0x203   : > { %2002 = vmatpush3.bf16.msra.mxu0 %v2378_v4 }
 0x204   : > { %2024 = vmatpush3.bf16.msra.mxu1 %v2379_v5  ;;  %2003 = vmatprep.subr.bf16.mxu0 %v2380_v6 }
 0x205   : > { %2025 = vmatprep.subr.bf16.mxu1 %v2381_v7 }
 0x207   : > { %2004 = vmatpush3.bf16.msra.mxu0 %v2382_v8 }
 0x208   : > { %2026 = vmatpush3.bf16.msra.mxu1 %v2383_v9  ;;  %2005 = vmatprep.subr.bf16.mxu0 %v2384_v12 }
 0x209   : > { %2027 = vmatprep.subr.bf16.mxu1 %v2385_v13 }
 0x20b   : > { %2006 = vmatpush3.bf16.msra.mxu0 %v2386_v14 }
 0x20c   : > { %2028 = vmatpush3.bf16.msra.mxu1 %v2387_v15  ;;  %2007 = vmatprep.subr.bf16.mxu0 %v2388_v16 }
 0x20d   : > { %2029 = vmatprep.subr.bf16.mxu1 %v2389_v17 }
 0x20f   : > { %2008 = vmatpush3.bf16.msra.mxu0 %v2390_v18 }
 0x210   : > { %2030 = vmatpush3.bf16.msra.mxu1 %v2391_v19 }
 0x212   : > { %1644 = vmatmul.mubr.bf16.vlgmr.msra.gmra.mxu0 %v1351_v10 }
 0x213   : > { %1685 = vmatmul.mubr.bf16.vlgmr.msra.gmra.mxu1 %v1353_v29 }
 0x2d2   : > { %v2009_v30 = vpop.f32.mrf.mxu0 }
 0x2d3   : > { %v2031_v31 = vpop.f32.mrf.mxu1 }
 0x2d4   : > { %v2010_v32 = vpop.f32.mrf.mxu0 }
 0x2d5   : > { %v2011_v33 = vadd.f32 %v2010_v32, %v2009_v30  ;;  %v2032_v34 = vpop.f32.mrf.mxu1 }
 0x2d6   : > { %v2033_v35 = vadd.f32 %v2032_v34, %v2031_v31  ;;  %v2012_v36 = vpop.f32.mrf.mxu0 }
 0x2d7   : > { %v2034_v38 = vpop.f32.mrf.mxu1 }
 0x2d8   : > { %v1687_v39 = vadd.f32 %v2033_v35, %v2011_v33  ;;  %v2013_v40 = vpop.f32.mrf.mxu0 }
 0x2d9   : > { %v2014_v41 = vadd.f32 %v2013_v40, %v2012_v36  ;;  %v2035_v42 = vpop.f32.mrf.mxu1 }
 0x2da   : > { %v1693_v43 = vadd.f32 %v1687_v39, %v1341_v37  ;;  %v2036_v44 = vadd.f32 %v2035_v42, %v2034_v38 }
 0x2dc   : > { %1695 = vst [vmem:[%s3112_s30] sm:$0xff] %v1693_v43  ;;  %v1690_v46 = vadd.f32 %v2036_v44, %v2014_v41 }
 0x2de   : > { %v1694_v47 = vadd.f32 %v1690_v46, %v1342_v45 }
 0x2e0   : > { %1696 = vst [vmem:[%s3112_s30 + $0x8] sm:$0xff] %v1694_v47 }
 0x2e1 PF: > { %s20_s27 = sadd.s32 1, %s2584_s27   ;;  %s3114_s11 = sld [smem:[#allocation21_spill]] }
 0x2e2   : > { %p3017_p0 = scmp.ge.s32.totalorder %s20_s27, 6   ;;  %s3115_s10 = sld [smem:[#allocation12_spill]] }
 0x2e3   : > { %s3116_s20 = sld [smem:[#allocation20_spill]]  ;;  %s3122_s15 = smov %s2540_s16 }
 0x2e4   : > { %s3117_s21 = sld [smem:[#allocation13_spill]]  ;;  %s3123_s16 = smov %s2544_s17 }
 0x2e5   : > { %s3118_s22 = sld [smem:[#allocation19_spill]]  ;;  %s3125_s18 = smov %s2552_s19 }
 0x2e6   : > { %s3119_s23 = sld [smem:[#allocation16_spill]]  ;;  %s3127_s24 = smov %s2580_s26 }
 0x2e7   : > { %s3120_s25 = sld [smem:[#allocation17_spill]]  ;;  %s3124_s17 = smov %s3114_s11 }
 0x2e8   : > { %s3121_s4 = sld [smem:[#allocation18_spill]]  ;;  %s3126_s19 = smov %s3115_s10 }
 0x2ea   :  { %19 = sbr.rel (!%p3017_p0) target bundleno = 15 (0xf), region = 132 }
 0x2ee   : > { %s3128_s26 = smov %s3121_s4 }
 0x2ef   :  { %1708 = vsyncpa [#allocation5], 1 }
 0x2f0   :  { %1710 = vsyncpa [#allocation5 + $0x1], 1 }
 0x2f1   :  { %1711 = vsyncpa [#allocation7], 1 }
 0x2f2   :  { %1713 = vsyncpa [#allocation7 + $0x1], 1 }

</bundles_post_ra>
